<compile_context>
chip_gen: v5e
topology: v5e:2x2
jax: 0.10.0
libtpu: 0.0.40
codegen_flags: <defaults>
</compile_context>

<pallas_src>
import jax
import jax.numpy as jnp
from jax.experimental import pallas as pl
from jax.experimental.pallas import tpu as pltpu


def _coordconv_kernel(x_ref, w_ref, cb_ref, o_ref):
    # x_ref:  (1, C, T)  input tile, NCHW spatial-flattened (lane dim = spatial)
    # w_ref:  (O, C)     1x1 conv weights for the real input channels
    # cb_ref: (O, T)     precomputed coord-channel contribution + bias
    # o_ref:  (1, O, T)  output tile (lane dim = spatial -> lane-dense stores)
    x = x_ref[0]                                             # (C, T)
    out = jnp.dot(w_ref[...], x, preferred_element_type=jnp.float32)  # (O, T)
    o_ref[0] = (out + cb_ref[...]).astype(o_ref.dtype)


def _pick_spatial_tile(hw, c, o, target_bytes=4 << 20):
    """Largest multiple-of-128 divisor of hw whose double-buffered per-step
    VMEM footprint (x + coord_bias + out, f32) stays under target_bytes.
    Falls back to the full spatial extent if hw is not a multiple of 128
    (a block equal to the full array dim is always legal)."""
    if hw % 128 != 0:
        return hw
    bytes_per_lane = 4 * (c + 2 * o)
    cap = max(128, target_bytes // (2 * bytes_per_lane))
    best = 128
    t = 128
    while t <= hw:
        if hw % t == 0 and t <= cap:
            best = t
        t += 128
    return best


def coordconv_pallas(x_nchw, weight, bias, *, with_r: bool = False):
    """CoordConv forward (AddCoords + 1x1 Conv2d).

    Args:
      x_nchw: (B, C, H, W) float32 input, PyTorch NCHW convention.
      weight: (O, C + extra, 1, 1) 1x1 conv weight (PyTorch layout).
      bias:   (O,) conv bias.
    Returns:
      (B, O, H, W) float32 output.
    """
    B, C, H, W = x_nchw.shape
    O = weight.shape[0]
    extra = 3 if with_r else 2
    assert weight.shape == (O, C + extra, 1, 1), weight.shape
    HW = H * W

    w = weight.reshape(O, C + extra).astype(jnp.float32)
    w_in = w[:, :C]                      # (O, C)   -> MXU matmul inside kernel
    w_coord = w[:, C:]                   # (O, extra)

    # Coordinate planes (identical for every batch element); xx varies along H
    # (x_dim), yy varies along W (y_dim), matching the PyTorch AddCoords.
    # Degenerate H==1 / W==1 guarded (the PyTorch code would produce NaN there).
    hh = jax.lax.broadcasted_iota(jnp.float32, (H, W), 0)
    ww = jax.lax.broadcasted_iota(jnp.float32, (H, W), 1)
    xx = hh * (2.0 / max(H - 1, 1)) - 1.0
    yy = ww * (2.0 / max(W - 1, 1)) - 1.0
    coords = [xx, yy]
    if with_r:
        coords.append(jnp.sqrt((xx - 0.5) ** 2 + (yy - 0.5) ** 2))
    coord = jnp.stack(coords, axis=0).reshape(extra, HW)          # (extra, HW)

    # Fold coord channels + conv bias into one (O, HW) bias plane (tiny einsum).
    coord_bias = jnp.dot(w_coord, coord) + bias.astype(jnp.float32)[:, None]

    # NCHW spatial flatten is a free view (no data movement).
    x_flat = x_nchw.reshape(B, C, HW)

    T = _pick_spatial_tile(HW, C, O)
    num_t = HW // T

    out_flat = pl.pallas_call(
        _coordconv_kernel,
        out_shape=jax.ShapeDtypeStruct((B, O, HW), x_nchw.dtype),
        grid_spec=pltpu.PrefetchScalarGridSpec(
            num_scalar_prefetch=0,
            grid=(B, num_t),
            in_specs=[
                pl.BlockSpec((1, C, T), lambda b, t: (b, 0, t)),
                pl.BlockSpec((O, C), lambda b, t: (0, 0)),     # resident weight
                pl.BlockSpec((O, T), lambda b, t: (0, t)),     # coord-bias tile
            ],
            out_specs=pl.BlockSpec((1, O, T), lambda b, t: (b, 0, t)),
        ),
        compiler_params=pltpu.CompilerParams(
            dimension_semantics=("parallel", "parallel"),
            vmem_limit_bytes=32 << 20,
        ),
    )(x_flat, w_in, coord_bias)

    return out_flat.reshape(B, O, H, W)   # free view, already NCHW


def _reference_coordconv(x_nchw, weight, bias, *, with_r: bool = False):
    """Plain-JAX reference mirroring the PyTorch module."""
    B, C, H, W = x_nchw.shape
    xx = (jnp.arange(H, dtype=jnp.float32) / (H - 1)) * 2.0 - 1.0  # varies along H
    yy = (jnp.arange(W, dtype=jnp.float32) / (W - 1)) * 2.0 - 1.0  # varies along W
    xx_c = jnp.broadcast_to(xx[None, None, :, None], (B, 1, H, W))
    yy_c = jnp.broadcast_to(yy[None, None, None, :], (B, 1, H, W))
    feats = [x_nchw, xx_c, yy_c]
    if with_r:
        feats.append(jnp.sqrt((xx_c - 0.5) ** 2 + (yy_c - 0.5) ** 2))
    ret = jnp.concatenate(feats, axis=1)  # (B, C+extra, H, W)
    O = weight.shape[0]
    w = weight.reshape(O, -1)  # (O, Cin)
    out = jnp.einsum("bchw,oc->bohw", ret, w) + bias[None, :, None, None]
    return out


if __name__ == "__main__":
    key = jax.random.PRNGKey(0)
    B, C, H, W = 2, 4, 16, 16
    out_channels = 8

    for with_r in (False, True):
        extra = 3 if with_r else 2
        k_x, k_w, k_b, key = jax.random.split(key, 4)
        x = jax.random.normal(k_x, (B, C, H, W), dtype=jnp.float32)

        # Deterministic parameter init (mimics PyTorch Conv2d kaiming-uniform scale).
        fan_in = (C + extra) * 1 * 1
        bound = 1.0 / (fan_in ** 0.5)
        weight = jax.random.uniform(
            k_w, (out_channels, C + extra, 1, 1), jnp.float32, -bound, bound
        )
        bias = jax.random.uniform(k_b, (out_channels,), jnp.float32, -bound, bound)

        out = coordconv_pallas(x, weight, bias, with_r=with_r)
        out = jax.block_until_ready(out)

        ref = _reference_coordconv(x, weight, bias, with_r=with_r)
        assert out.shape == (B, out_channels, H, W), out.shape
        assert jnp.allclose(out, ref, atol=1e-5, rtol=1e-5), (
            f"mismatch vs reference (with_r={with_r})"
        )

    print("KERNEL_OK")
</pallas_src>

<mosaic_0001>
module attributes {stable_mosaic.version = 11 : i64} {
  func.func @_coordconv_kernel(%arg0: i32, %arg1: i32, %arg2: memref<1x4x256xf32, #tpu.memory_space<vmem>>, %arg3: memref<8x4xf32, #tpu.memory_space<vmem>>, %arg4: memref<8x256xf32, #tpu.memory_space<vmem>>, %arg5: memref<1x8x256xf32, #tpu.memory_space<vmem>>) attributes {dimension_semantics = [#tpu.dimension_semantics<parallel>, #tpu.dimension_semantics<parallel>], iteration_bounds = array<i64: 2, 1>, scalar_prefetch = 0 : i64, scratch_operands = 0 : i64, tpu.core_type = #tpu.core_type<tc>, window_params = [{transform_indices = @transform_0, window_bounds = array<i64: 1, 4, 256>}, {pipeline_mode = #tpu.pipeline_mode<synchronous>, transform_indices = @transform_1, window_bounds = array<i64: 8, 4>}, {transform_indices = @transform_2, window_bounds = array<i64: 8, 256>}, {transform_indices = @transform_3, window_bounds = array<i64: 1, 8, 256>}]} {
    %c0 = arith.constant 0 : index
    %c0_0 = arith.constant 0 : index
    %c0_1 = arith.constant 0 : index
    %0 = vector.load %arg2[%c0, %c0_0, %c0_1] : memref<1x4x256xf32, #tpu.memory_space<vmem>>, vector<1x4x256xf32>
    %1 = vector.shape_cast %0 : vector<1x4x256xf32> to vector<4x256xf32>
    %c0_2 = arith.constant 0 : index
    %c0_3 = arith.constant 0 : index
    %2 = vector.load %arg3[%c0_2, %c0_3] : memref<8x4xf32, #tpu.memory_space<vmem>>, vector<8x4xf32>
    %cst = arith.constant dense<0.000000e+00> : vector<8x256xf32>
    %3 = tpu.matmul %2, %1, %cst {dimension_numbers = #tpu.dot_dimension_numbers<[1], [0], [0], [1], [0, 0, 1, 1], [], []>} : vector<8x4xf32>, vector<4x256xf32>, vector<8x256xf32> -> vector<8x256xf32>
    %c0_4 = arith.constant 0 : index
    %c0_5 = arith.constant 0 : index
    %4 = vector.load %arg4[%c0_4, %c0_5] : memref<8x256xf32, #tpu.memory_space<vmem>>, vector<8x256xf32>
    %5 = arith.addf %3, %4 : vector<8x256xf32>
    %c0_6 = arith.constant 0 : index
    %c0_7 = arith.constant 0 : index
    %c0_8 = arith.constant 0 : index
    %6 = vector.load %arg5[%c0_6, %c0_7, %c0_8] : memref<1x8x256xf32, #tpu.memory_space<vmem>>, vector<1x8x256xf32>
    %7 = vector.shape_cast %6 : vector<1x8x256xf32> to vector<8x256xf32>
    %8 = vector.shape_cast %5 : vector<8x256xf32> to vector<1x8x256xf32>
    tpu.vector_store %arg5[%c0_6, %c0_7, %c0_8], %8 {strides = array<i32>} : memref<1x8x256xf32, #tpu.memory_space<vmem>>, vector<1x8x256xf32>,
    return
  }
  func.func @transform_0(%arg0: i32, %arg1: i32) -> (i32, i32, i32) {
    %c0_i32 = arith.constant 0 : i32
    %c0_i32_0 = arith.constant 0 : i32
    return %arg0, %c0_i32, %arg1 : i32, i32, i32
  }
  func.func @transform_1(%arg0: i32, %arg1: i32) -> (i32, i32) {
    %c0_i32 = arith.constant 0 : i32
    %c0_i32_0 = arith.constant 0 : i32
    %c0_i32_1 = arith.constant 0 : i32
    return %c0_i32, %c0_i32_0 : i32, i32
  }
  func.func @transform_2(%arg0: i32, %arg1: i32) -> (i32, i32) {
    %c0_i32 = arith.constant 0 : i32
    %c0_i32_0 = arith.constant 0 : i32
    return %c0_i32, %arg1 : i32, i32
  }
  func.func @transform_3(%arg0: i32, %arg1: i32) -> (i32, i32, i32) {
    %c0_i32 = arith.constant 0 : i32
    %c0_i32_0 = arith.constant 0 : i32
    return %arg0, %c0_i32, %arg1 : i32, i32, i32
  }
}

</mosaic_0001>

<bundles_post_ra>
// kernel: tpu_custom_call.1
= control target key start
LH: loop header
LB: loop body
LE: loop exit
PB: predicated region body
PF: predicated region fallthrough
CT: control target
= control target key end

     0   :  { %8 = vsyncpa [#allocation3], 0  ;;  %s825_s0 = inlined_call_operand.hbm [shape: f32[2,4,256], index: 0, kind: input, shape index: {}]   ;;  %s826_s1 = inlined_call_operand.vmem [shape: f32[8,4], index: 1, kind: input, shape index: {}]   ;;  %s827_s2 = inlined_call_operand.hbm [shape: f32[8,256], index: 2, kind: input, shape index: {}]   ;;  %s828_s3 = inlined_call_operand.hbm [shape: f32[2,8,256], index: 3, kind: output, shape index: {}]  }
   0x1   :  { %10 = vsyncpa [#allocation3 + $0x1], 0 }
   0x2   :  { %11 = vsyncpa [#allocation6], 0 }
   0x3   :  { %12 = vsyncpa [#allocation4], 0 }
   0x4   :  { %14 = vsyncpa [#allocation4 + $0x1], 0  ;;  %s672_s12 = smov 0   ;;  %s674_s13 = smov 0  }
   0x5   :  { %s676_s14 = smov 0   ;;  %s678_s15 = smov 0  }
   0x6   :  { %s680_s16 = smov 0   ;;  %s682_s17 = smov 0  }
   0x7 LB: > { %s407_s18 = sadd.s32 4294967295, %s649_s17   ;;  %s408_s19 = sadd.s32 4294967294, %s649_s17   ;;  %s649_s17 = sphi %s682_s17, %s20_s17   ;;  %s645_s16 = sphi %s680_s16, %s840_s16   ;;  %s641_s15 = sphi %s678_s15, %s839_s15   ;;  %s637_s14 = sphi %s676_s14, %s838_s14   ;;  %s633_s13 = sphi %s674_s13, %s837_s13   ;;  %s629_s12 = sphi %s672_s12, %s836_s12  }
   0x8   : > { %p54_p0 = scmp.ne.s32.totalorder %s633_s13, %s629_s12  ;;  %p706_p1 = scmp.eq.s32.totalorder %s407_s18, 0 }
   0x9   : > { %p710_p2 = scmp.eq.s32.totalorder %s407_s18, 1  ;;  %p133_p3 = scmp.eq.s32.totalorder %s408_s19, 1 }
   0xa   : > { %p716_p4 = por %p706_p1, %p54_p0  ;;  %p409_p5 = scmp.ge.s32.totalorder %s649_s17, 1 }
   0xb   : > { %p721_p6 = por %p133_p3, %p54_p0  ;;  %p140_p7 = scmp.lt.s32.totalorder %s649_s17, 3 }
   0xc   : > { %s158_s26 = sshll.u32 %s827_s2, 4  ;;  %p411_p9 = scmp.ge.s32.totalorder %s649_s17, 2  ;;  %s159_s26 = int_to_ptr.hbm [resolvable:$true] %s158_s26 }
   0xd   : > { %p729_p8 = pnand %p409_p5, %p140_p7  ;;  %s651_s28 = smov [#allocation5]  }
   0xe   : > { %s160_s29 = sshll.u32 %s651_s28, 4  ;;  %s32_s30 = sadd.s32 1, %s645_s16  ;;  %s161_s29 = int_to_ptr.vmem [resolvable:$true] %s160_s29 }
   0xf   : > { %p438_p10 = pneg %p729_p8  ;;  %p34_p12 = scmp.ge.s32.totalorder %s32_s30, 2 }
  0x10   : > { %s41_s4 = sadd.s32 1, %s637_s14  ;;  %p48_p13 = scmp.ne.s32.totalorder %s637_s14, %s633_s13 }
  0x11   : > { %p439_p11 = pnand %p438_p10, %p706_p1  ;;  %p49_p0 = scmp.eq.s32.totalorder %s649_s17, 0 }
  0x12   : > { %s842_s30 = smov (%p34_p12, %s32_s30), 0  ;;  %p751_p5 = por %p710_p2, %p48_p13 }
  0x13   : > { %441 = dma.hbm_to_vmem [thread:$0]  (!%p439_p11), %s159_s26, 256, %s161_s29, [#allocation6]  }
  0x14   : > { %p745_p3 = por %p49_p0, %p48_p13  ;;  %s36_s7 = ssub.s32 %s645_s16, %s842_s30 }
  0x15   : > { %p451_p7 = scmp.lt.s32.totalorder %s649_s17, 2  ;;  %p39_p10 = scmp.eq.s32.totalorder %s36_s7, 0 }
  0x16   : > { %s171_s8 = sand.u32 1, %s637_s14   ;;  %s428_s11 = sshll.u32 %s645_s16, 3 }
  0x17   : > { %s412_s9 = sshll.u32 %s171_s8, 3  ;;  %s182_s24 = scalar_lea.hbm %s825_s0, %s428_s11 }
  0x18   : > { %s760_s10 = scalar_select %p39_p10, %s637_s14, %s41_s4  }
  0x19   : > { %s175_s25 = scalar_lea.vmem [#allocation2], %s412_s9  ;;  %s184_s21 = sshll.u32 %s182_s24, 4  ;;  %s185_s21 = int_to_ptr.hbm [resolvable:$true] %s184_s21 }
  0x1a   : > { %s186_s26 = sshll.u32 %s175_s25, 4  ;;  %p443_p2 = pnand %p451_p7, %p745_p3  ;;  %s187_s26 = int_to_ptr.vmem [resolvable:$true] %s186_s26 }
  0x1b   : > { %s172_s28 = scalar_lea.sflag [#allocation3], %s171_s8  ;;  %195 = sbr.rel (%p729_p8) target bundleno = 177 (0xb1), region = 32 }
  0x1c   : > { %445 = dma.hbm_to_vmem [thread:$0]  (!%p443_p2), %s185_s21, 128, %s187_s26, %s172_s28  }
  0x1d   : > { %s771_s29 = sand.u32 (!%p729_p8), 1, %s633_s13  }
  0x1e   : > { %s416_s4 = sshll.u32 (!%p729_p8), %s771_s29, 3  ;;  %s198_s7 = scalar_lea.sflag (!%p729_p8), [#allocation3], %s771_s29 }
  0x1f   : > { %s201_s9 = scalar_lea.vmem (!%p729_p8), [#allocation2], %s416_s4 }
  0x20   : > { %616 = dma.done.wait (%p716_p4), %s198_s7, 128  }
  0x21   : > { %618 = vsyncadd (%p716_p4), %s198_s7, 4294967168 }
  0x22   : > { %620 = dma.done.wait (%p706_p1), [#allocation6], 256  }
  0x23   : > { %622 = vsyncadd (%p706_p1), [#allocation6], 4294967040  ;;  %v233_v0 = vld [vmem:[%s201_s9] sm:$0xff]  ;;  %vm245_vm0 = vcmask 1043456   ;;  %v234_v1 = vld [vmem:[%s826_s1] sm:$0xff]  ;;  %vm241_vm1 = vcmask 31744  }
  0x24   : > { %238 = vst [vmem:[#allocation1] ss:$2 sm:$0xff] %v233_v0  ;;  %s418_s22 = sshll.u32 %s771_s29, 4  ;;  %s429_s20 = sshll.u32 %s641_s15, 4  ;;  %v235_v4 = vld [vmem:[#allocation5] sm:$0xff]  ;;  %v236_v5 = vld [vmem:[#allocation5 + $0x8] sm:$0xff] }
  0x25   : > { %s306_s18 = scalar_lea.hbm %s828_s3, %s429_s20  ;;  %s229_s19 = scalar_lea.vmem [#allocation7], %s418_s22 }
  0x26   : > { %s308_s24 = sshll.u32 %s229_s19, 4  ;;  %s310_s25 = sshll.u32 %s306_s18, 4  ;;  %s309_s24 = int_to_ptr.vmem [resolvable:$true] %s308_s24  ;;  %s311_s25 = int_to_ptr.hbm [resolvable:$true] %s310_s25 }
  0x27   : > { %s293_s26 = scalar_lea.sflag [#allocation4], %s771_s29  ;;  %s577_s15 = sshra.s32 %s311_s25, 4  ;;  %s578_s15 = int_to_ptr.hbm [resolvable:$true] %s577_s15 }
  0x28   : > { %s579_s21 = scalar_lea.hbm %s578_s15, 16  ;;  %s583_s7 = scalar_lea.hbm %s828_s3, 32 }
  0x29   : > { %p580_p1 = scmp.ne.s32.totalorder %s578_s15, %s579_s21  ;;  %p584_p11 = scmp.lt.s32.totalorder %s578_s15, %s828_s3 }
  0x2a   : > { %p585_p12 = scmp.lt.s32.totalorder %s583_s7, %s579_s21 }
  0x2b   : > { %v239_v2 = vld.sshfl [vmem:[#allocation1] sm:$0xff pattern:$0x75316420]  ;;  %v240_v3 = vld.sshfl [vmem:[#allocation1 + $0x8] sm:$0xff pattern:$0x75316420]  ;;  %p581_p4 = pnand %p580_p1, %p751_p5 }
  0x2c   : > { %419 = vmatpush.msk.msra.mxu0 %vm245_vm0, %v239_v2  ;;  %421 = vmatpush.msk.msra.mxu1 %vm245_vm0, %v240_v3  ;;  %p586_p13 = por %p585_p12, %p584_p11 }
  0x2d   : > { %420 = vmatmul.msk.f32.vlgmr.msra.gmra.mxu0 %vm241_vm1, %v234_v1  ;;  %422 = vmatmul.msk.f32.vlgmr.msra.gmra.mxu1 %vm241_vm1, %v234_v1  ;;  %p582_p8 = pneg %p581_p4 }
  0x2f   : > { %p587_p0 = pnand %p586_p13, %p582_p8 }
  0xaa   : > { %v267_v6 = vpop.f32.mrf.mxu0  ;;  %v287_v7 = vpop.f32.mrf.mxu1 }
  0xab   : > { %v268_v8 = vadd.f32 %v267_v6, %v235_v4  ;;  %v288_v9 = vadd.f32 %v287_v7, %v236_v5 }
  0xad   : > { %290 = vst [vmem:[%s229_s19] sm:$0xff] %v268_v8 }
  0xae   : > { %291 = vst [vmem:[%s229_s19 + $0x8] sm:$0xff] %v288_v9 }
  0xaf   : > { %590 = shalt.err (!%p587_p0)
}
  0xb0   : > { %436 = dma.vmem_to_hbm [thread:$0]  (%p751_p5), %s309_s24, 256, %s311_s25, %s293_s26  }
  0xb1 PF: > { %s322_s29 = sand.u32 1, %s629_s12   ;;  %p447_p3 = pnand %p411_p9, %p721_p6 }
  0xb2   : > { %s323_s5 = scalar_lea.sflag [#allocation4], %s322_s29 }
  0xb3   : > { %p448_p7 = pneg %p447_p3 }
  0xb5   : > { %624 = dma.done.wait (%p448_p7), %s323_s5, 256  }
  0xb6   : > { %626 = vsyncadd (%p448_p7), %s323_s5, 4294967040  ;;  %s20_s17 = sadd.s32 1, %s649_s17   ;;  %s836_s12 = smov %s633_s13 }
  0xb7   : > { %p17_p10 = scmp.ge.s32.totalorder %s20_s17, 4   ;;  %s837_s13 = smov %s637_s14 }
  0xb8   : > { %s838_s14 = smov %s760_s10  ;;  %s839_s15 = smov %s645_s16 }
  0xb9   : > { %s840_s16 = smov %s842_s30  ;;  %19 = sbr.rel (!%p17_p10) target bundleno = 7 (0x7), region = 82 }
  0xbe   :  { %329 = vsyncpa [#allocation3], 1 }
  0xbf   :  { %331 = vsyncpa [#allocation3 + $0x1], 1 }
  0xc0   :  { %332 = vsyncpa [#allocation6], 1 }
  0xc1   :  { %333 = vsyncpa [#allocation4], 1 }
  0xc2   :  { %335 = vsyncpa [#allocation4 + $0x1], 1 }

</bundles_post_ra>
